<compile_context>
chip_gen: v6e
topology: v6e:2x2x1
jax: 0.10.0
libtpu: 0.0.40
codegen_flags: <defaults>
</compile_context>

<pallas_src>
import math

import jax
import jax.numpy as jnp
from jax.experimental import pallas as pl
from jax.experimental.pallas import tpu as pltpu


# ---------------------------------------------------------------------------
# Stage 1: input projection  xproj = x @ W_ih^T + (b_ih + b_hh)
# ---------------------------------------------------------------------------
def _input_proj_kernel(x_ref, w_ref, b_ref, o_ref):
    # x_ref: (bm, H) f32   w_ref: (H, 4H) mxu dtype   b_ref: (1, 4H) f32
    # o_ref: (bm, 4H) f32
    w = w_ref[...]
    acc = jnp.dot(x_ref[...].astype(w.dtype), w,
                  preferred_element_type=jnp.float32)
    o_ref[...] = (acc + b_ref[...]).astype(o_ref.dtype)


# ---------------------------------------------------------------------------
# Stage 2: the serial LSTM recurrence over time chunks
# ---------------------------------------------------------------------------
def _lstm_recurrence_kernel(xp_ref, w_ref, o_ref, h_ref, c_ref):
    # xp_ref: (tt, Bb, 4H) f32   precomputed x @ W_ih^T + bias
    # w_ref : (H, 4H)            W_hh^T in MXU dtype (bf16 on v6e/v7x)
    # o_ref : (tt, Bb, H) f32    hidden-state outputs
    # h_ref, c_ref: (Bb, H) f32  VMEM scratch persisting across time chunks
    tt, _, H4 = xp_ref.shape
    H = H4 // 4

    @pl.when(pl.program_id(1) == 0)      # first time chunk of this batch block
    def _():
        h_ref[...] = jnp.zeros_like(h_ref)
        c_ref[...] = jnp.zeros_like(c_ref)

    w = w_ref[...]                       # hoisted; reused every unrolled step

    def step(t, carry):
        h, c = carry
        # PyTorch gate order: i, f, g, o ; gates = h @ W_hh^T + (x proj + b)
        gates = jnp.dot(h.astype(w.dtype), w,
                        preferred_element_type=jnp.float32) + xp_ref[t]
        i = jax.nn.sigmoid(gates[:, 0:H])
        f = jax.nn.sigmoid(gates[:, H:2 * H])
        g = jnp.tanh(gates[:, 2 * H:3 * H])
        o = jax.nn.sigmoid(gates[:, 3 * H:4 * H])
        c = f * c + i * g
        h = o * jnp.tanh(c)
        o_ref[t] = h.astype(o_ref.dtype)
        return h, c

    h, c = jax.lax.fori_loop(0, tt, step, (h_ref[...], c_ref[...]),
                             unroll=min(tt, 8))
    h_ref[...] = h                       # carry state into the next time chunk
    c_ref[...] = c


# ---------------------------------------------------------------------------
# Wrapper
# ---------------------------------------------------------------------------
def _pick_block(n, target, align=8):
    """Largest divisor of n that is <= target and a multiple of `align`
    (falls back to the full dimension, which is always a legal block)."""
    if n <= target:
        return n
    for d in range(target, 0, -1):
        if n % d == 0 and d % align == 0:
            return d
    return n


def lstm_forward(x, params, *, block_b=None, block_t=None,
                 mxu_dtype=jnp.bfloat16):
    """x: (T, B, H) float32 -> (T, B, H) float32 (PyTorch nn.LSTM `output`)."""
    T, B, H = x.shape
    H4 = 4 * H

    # Packed weights: gates = x @ W_ih^T + h @ W_hh^T + (b_ih + b_hh)
    w_ihT = params["w_ih"].T.astype(mxu_dtype)                       # (H, 4H)
    w_hhT = params["w_hh"].T.astype(mxu_dtype)                       # (H, 4H)
    bias = (params["b_ih"] + params["b_hh"]).reshape(1, H4).astype(jnp.float32)

    # ---- Stage 1: one big parallel matmul over all T*B rows ---------------
    M = T * B
    bm = _pick_block(M, 256)
    xproj = pl.pallas_call(
        _input_proj_kernel,
        out_shape=jax.ShapeDtypeStruct((M, H4), jnp.float32),
        grid_spec=pltpu.PrefetchScalarGridSpec(
            num_scalar_prefetch=0,
            grid=(M // bm,),
            in_specs=[
                pl.BlockSpec((bm, H), lambda m: (m, 0)),
                pl.BlockSpec((H, H4), lambda m: (0, 0)),
                pl.BlockSpec((1, H4), lambda m: (0, 0)),
            ],
            out_specs=pl.BlockSpec((bm, H4), lambda m: (m, 0)),
        ),
        compiler_params=pltpu.CompilerParams(
            dimension_semantics=("parallel",),
            vmem_limit_bytes=32 * 1024 * 1024),
    )(x.reshape(M, H), w_ihT, bias)
    xproj = xproj.reshape(T, B, H4)

    # ---- Stage 2: recurrence, batch-parallel / time-streamed --------------
    if block_b is None:
        half = B // 2
        # Split the batch so the "parallel" axis has >= 2 steps (v7x megacore).
        block_b = half if (B % 2 == 0 and half % 8 == 0) else B
    if block_t is None:
        block_t = _pick_block(T, 16, align=1)
    assert B % block_b == 0 and (block_b % 8 == 0 or block_b == B)
    assert T % block_t == 0
    nb, nt = B // block_b, T // block_t

    return pl.pallas_call(
        _lstm_recurrence_kernel,
        out_shape=jax.ShapeDtypeStruct((T, B, H), jnp.float32),
        grid_spec=pltpu.PrefetchScalarGridSpec(
            num_scalar_prefetch=0,
            grid=(nb, nt),                     # batch outer, time inner
            in_specs=[
                pl.BlockSpec((block_t, block_b, H4),
                             lambda bb, ti: (ti, bb, 0)),
                pl.BlockSpec((H, H4), lambda bb, ti: (0, 0)),
            ],
            out_specs=pl.BlockSpec((block_t, block_b, H),
                                   lambda bb, ti: (ti, bb, 0)),
            scratch_shapes=[
                pltpu.VMEM((block_b, H), jnp.float32),   # h_{t-1}
                pltpu.VMEM((block_b, H), jnp.float32),   # c_{t-1}
            ],
        ),
        compiler_params=pltpu.CompilerParams(
            dimension_semantics=("parallel", "arbitrary"),
            vmem_limit_bytes=32 * 1024 * 1024),
    )(xproj, w_hhT)


# ---------------------------------------------------------------------------
# Synthetic parameters + pure-JAX reference
# ---------------------------------------------------------------------------
def make_params(key, H):
    """Synthetic nn.LSTM(H, H) params (PyTorch init: U(-1/sqrt(H), 1/sqrt(H)))."""
    k1, k2, k3, k4 = jax.random.split(key, 4)
    bound = 1.0 / math.sqrt(H)
    return {
        "w_ih": jax.random.uniform(k1, (4 * H, H), jnp.float32, -bound, bound),
        "w_hh": jax.random.uniform(k2, (4 * H, H), jnp.float32, -bound, bound),
        "b_ih": jax.random.uniform(k3, (4 * H,), jnp.float32, -bound, bound),
        "b_hh": jax.random.uniform(k4, (4 * H,), jnp.float32, -bound, bound),
    }


def ref_lstm(x, p):
    """Pure-JAX reference of PyTorch nn.LSTM forward (zero init states)."""
    T, B, H = x.shape
    w_ih, w_hh, b_ih, b_hh = p["w_ih"], p["w_hh"], p["b_ih"], p["b_hh"]
    hp = jax.lax.Precision.HIGHEST

    def step(carry, xt):
        h, c = carry
        gates = (jnp.dot(xt, w_ih.T, precision=hp) + b_ih
                 + jnp.dot(h, w_hh.T, precision=hp) + b_hh)
        i = jax.nn.sigmoid(gates[:, 0:H])
        f = jax.nn.sigmoid(gates[:, H:2 * H])
        g = jnp.tanh(gates[:, 2 * H:3 * H])
        o = jax.nn.sigmoid(gates[:, 3 * H:4 * H])
        c = f * c + i * g
        h = o * jnp.tanh(c)
        return (h, c), h

    init = (jnp.zeros((B, H), jnp.float32), jnp.zeros((B, H), jnp.float32))
    _, ys = jax.lax.scan(step, init, x)
    return ys


if __name__ == "__main__":
    T, B, H = 8, 16, 32          # small shapes: seq=8, batch=16, hidden=32
    key = jax.random.PRNGKey(0)
    kx, kp = jax.random.split(key)
    x = jax.random.normal(kx, (T, B, H), jnp.float32)
    params = make_params(kp, H)

    ref = ref_lstm(x, params)

    # Exact f32-MXU path: tight tolerance (block_t=4 -> 2 time chunks,
    # block_b defaults to 8 -> 2 batch blocks, exercising both grid axes).
    out_f32 = jax.block_until_ready(
        lstm_forward(x, params, block_t=4, mxu_dtype=jnp.float32))
    assert out_f32.shape == (T, B, H)
    assert jnp.allclose(out_f32, ref, atol=1e-4, rtol=1e-4), "f32 mismatch"

    # Default bf16-MXU path (production config for v6e/v7x): looser tolerance.
    out = jax.block_until_ready(lstm_forward(x, params, block_t=4))
    assert out.shape == (T, B, H)
    assert jnp.allclose(out, ref, atol=5e-2, rtol=5e-2), "bf16 mismatch"

    print("KERNEL_OK")
</pallas_src>

<mosaic_0001>
module attributes {stable_mosaic.version = 11 : i64} {
  func.func @_input_proj_kernel(%arg0: i32, %arg1: memref<128x32xf32, #tpu.memory_space<vmem>>, %arg2: memref<32x128xf32, #tpu.memory_space<vmem>>, %arg3: memref<1x128xf32, #tpu.memory_space<vmem>>, %arg4: memref<128x128xf32, #tpu.memory_space<vmem>>) attributes {dimension_semantics = [#tpu.dimension_semantics<parallel>], iteration_bounds = array<i64: 1>, scalar_prefetch = 0 : i64, scratch_operands = 0 : i64, tpu.core_type = #tpu.core_type<tc>, window_params = [{transform_indices = @transform_0, window_bounds = array<i64: 128, 32>}, {pipeline_mode = #tpu.pipeline_mode<synchronous>, transform_indices = @transform_1, window_bounds = array<i64: 32, 128>}, {pipeline_mode = #tpu.pipeline_mode<synchronous>, transform_indices = @transform_2, window_bounds = array<i64: 1, 128>}, {transform_indices = @transform_3, window_bounds = array<i64: 128, 128>}]} {
    %c0 = arith.constant 0 : index
    %c0_0 = arith.constant 0 : index
    %0 = vector.load %arg2[%c0, %c0_0] : memref<32x128xf32, #tpu.memory_space<vmem>>, vector<32x128xf32>
    %c0_1 = arith.constant 0 : index
    %c0_2 = arith.constant 0 : index
    %1 = vector.load %arg1[%c0_1, %c0_2] : memref<128x32xf32, #tpu.memory_space<vmem>>, vector<128x32xf32>
    %cst = arith.constant dense<0.000000e+00> : vector<128x128xf32>
    %2 = tpu.matmul %1, %0, %cst {dimension_numbers = #tpu.dot_dimension_numbers<[1], [0], [0], [1], [0, 0, 1, 1], [], []>} : vector<128x32xf32>, vector<32x128xf32>, vector<128x128xf32> -> vector<128x128xf32>
    %c0_3 = arith.constant 0 : index
    %c0_4 = arith.constant 0 : index
    %3 = vector.load %arg3[%c0_3, %c0_4] : memref<1x128xf32, #tpu.memory_space<vmem>>, vector<1x128xf32>
    %4 = vector.broadcast %3 : vector<1x128xf32> to vector<128x128xf32>
    %5 = arith.addf %2, %4 : vector<128x128xf32>
    %c0_5 = arith.constant 0 : index
    %c0_6 = arith.constant 0 : index
    %6 = vector.load %arg4[%c0_5, %c0_6] : memref<128x128xf32, #tpu.memory_space<vmem>>, vector<128x128xf32>
    tpu.vector_store %arg4[%c0_5, %c0_6], %5 {strides = array<i32>} : memref<128x128xf32, #tpu.memory_space<vmem>>, vector<128x128xf32>,
    return
  }
  func.func @transform_0(%arg0: i32) -> (i32, i32) {
    %c0_i32 = arith.constant 0 : i32
    %c0_i32_0 = arith.constant 0 : i32
    return %arg0, %c0_i32 : i32, i32
  }
  func.func @transform_1(%arg0: i32) -> (i32, i32) {
    %c0_i32 = arith.constant 0 : i32
    %c0_i32_0 = arith.constant 0 : i32
    %c0_i32_1 = arith.constant 0 : i32
    return %c0_i32, %c0_i32_0 : i32, i32
  }
  func.func @transform_2(%arg0: i32) -> (i32, i32) {
    %c0_i32 = arith.constant 0 : i32
    %c0_i32_0 = arith.constant 0 : i32
    %c0_i32_1 = arith.constant 0 : i32
    return %c0_i32, %c0_i32_0 : i32, i32
  }
  func.func @transform_3(%arg0: i32) -> (i32, i32) {
    %c0_i32 = arith.constant 0 : i32
    %c0_i32_0 = arith.constant 0 : i32
    return %arg0, %c0_i32 : i32, i32
  }
}

</mosaic_0001>

<bundles_post_ra>
// kernel: tpu_custom_call.1
= control target key start
LH: loop header
LB: loop body
LE: loop exit
PB: predicated region body
PF: predicated region fallthrough
CT: control target
= control target key end

     0   :  { %vm42_vm0 = vcmask 261120   ;;  %s475_s0 = inlined_call_operand.vmem [shape: f32[128,32], index: 0, kind: input, shape index: {}]   ;;  %s476_s1 = inlined_call_operand.vmem [shape: f32[32,128], index: 1, kind: input, shape index: {}]   ;;  %s477_s2 = inlined_call_operand.vmem [shape: f32[1,128], index: 2, kind: input, shape index: {}]   ;;  %s478_s3 = inlined_call_operand.hbm [shape: f32[128,128], index: 3, kind: output, shape index: {}]  }
   0x1   :  { %v18_v0 = vld [vmem:[%s476_s1 + $0x18] sm:$0xff]  ;;  %v17_v1 = vld [vmem:[%s476_s1 + $0x10] sm:$0xff]  ;;  %v16_v2 = vld [vmem:[%s476_s1 + $0x8] sm:$0xff] }
   0x2   :  { %305 = vmatprep.subr.mxu0 %v18_v0  ;;  %337 = vmatprep.subr.mxu1 %v18_v0  ;;  %v15_v3 = vld [vmem:[%s476_s1] sm:$0xff] }
   0x3   :  { %306 = vmatpush3.msra.mxu0 %v18_v0  ;;  %341 = vmatpush3.msra.mxu1 %v18_v0  ;;  %v19_v4 = vld [vmem:[%s475_s0] sm:$0xff] }
   0x4   :  { %307 = vmatprep.subr.mxu0 %v17_v1  ;;  %338 = vmatprep.subr.mxu1 %v17_v1  ;;  %v27_v5 = vld [vmem:[%s475_s0 + $0x40] sm:$0xff] }
   0x5   :  { %308 = vmatpush3.msra.mxu0 %v17_v1  ;;  %342 = vmatpush3.msra.mxu1 %v17_v1 }
   0x6   :  { %309 = vmatprep.subr.mxu0 %v16_v2  ;;  %339 = vmatprep.subr.mxu1 %v16_v2 }
   0x7   :  { %310 = vmatpush3.msra.mxu0 %v16_v2  ;;  %343 = vmatpush3.msra.mxu1 %v16_v2 }
   0x8   :  { %8 = vsyncpa [#allocation3], 0  ;;  %311 = vmatprep.subr.mxu0 %v15_v3  ;;  %340 = vmatprep.subr.mxu1 %v15_v3  ;;  %v20_v6 = vld [vmem:[%s475_s0 + $0x8] sm:$0xff]  ;;  %v21_v8 = vld [vmem:[%s475_s0 + $0x10] sm:$0xff] }
   0x9   :  { %v28_v7 = vld [vmem:[%s475_s0 + $0x48] sm:$0xff]  ;;  %312 = vmatpush3.msra.mxu0 %v15_v3  ;;  %344 = vmatpush3.msra.mxu1 %v15_v3  ;;  %v29_v9 = vld [vmem:[%s475_s0 + $0x50] sm:$0xff]  ;;  %v22_v10 = vld [vmem:[%s475_s0 + $0x18] sm:$0xff] }
   0xa   :  { %313 = vmatprep.mubr.msk.f32.mxu0 %vm42_vm0, %v19_v4  ;;  %325 = vmatprep.mubr.msk.f32.mxu1 %vm42_vm0, %v27_v5  ;;  %v30_v11 = vld [vmem:[%s475_s0 + $0x58] sm:$0xff]  ;;  %v23_v12 = vld [vmem:[%s475_s0 + $0x20] sm:$0xff]  ;;  %v24_v14 = vld [vmem:[%s475_s0 + $0x28] sm:$0xff] }
   0xb   :  { %314 = vmatmul.mubr.msk.f32.vlgmr.msra.gmra.mxu0 %vm42_vm0, %v20_v6  ;;  %326 = vmatmul.mubr.msk.f32.vlgmr.msra.gmra.mxu1 %vm42_vm0, %v28_v7  ;;  %v31_v13 = vld [vmem:[%s475_s0 + $0x60] sm:$0xff]  ;;  %v32_v15 = vld [vmem:[%s475_s0 + $0x68] sm:$0xff]  ;;  %v25_v16 = vld [vmem:[%s475_s0 + $0x30] sm:$0xff] }
   0xc   :  { %316 = vmatprep.mubr.msk.f32.mxu0 %vm42_vm0, %v21_v8  ;;  %328 = vmatprep.mubr.msk.f32.mxu1 %vm42_vm0, %v29_v9  ;;  %v33_v17 = vld [vmem:[%s475_s0 + $0x70] sm:$0xff]  ;;  %v26_v18 = vld [vmem:[%s475_s0 + $0x38] sm:$0xff]  ;;  %v268_v20 = vld [vmem:[%s477_s2] ss:$0 sm:$0xff] }
   0xd   :  { %v34_v19 = vld [vmem:[%s475_s0 + $0x78] sm:$0xff]  ;;  %s370_s0 = smov [#allocation2]  }
   0xe   :  { %s257_s2 = sshll.u32 %s370_s0, 4  ;;  %s258_s2 = int_to_ptr.vmem [resolvable:$true] %s257_s2 }
   0xf   :  { %317 = vmatmul.mubr.msk.f32.gmra.mxu0 %vm42_vm0, %v22_v10  ;;  %329 = vmatmul.mubr.msk.f32.gmra.mxu1 %vm42_vm0, %v30_v11  ;;  %s348_s1 = scalar_lea.vmem %s258_s2, 2048  ;;  %p353_p1 = scmp.lt.s32.totalorder %s258_s2, %s258_s2 }
  0x10   :  { %319 = vmatprep.mubr.msk.f32.mxu0 %vm42_vm0, %v23_v12  ;;  %331 = vmatprep.mubr.msk.f32.mxu1 %vm42_vm0, %v31_v13  ;;  %p349_p0 = scmp.ne.s32.totalorder %s258_s2, %s348_s1  ;;  %p354_p2 = scmp.lt.s32.totalorder %s348_s1, %s348_s1 }
  0x12   :  { %p355_p3 = por %p354_p2, %p353_p1 }
  0x13   :  { %320 = vmatmul.mubr.msk.f32.gmra.mxu0 %vm42_vm0, %v24_v14  ;;  %332 = vmatmul.mubr.msk.f32.gmra.mxu1 %vm42_vm0, %v32_v15 }
  0x14   :  { %322 = vmatprep.mubr.msk.f32.mxu0 %vm42_vm0, %v25_v16  ;;  %334 = vmatprep.mubr.msk.f32.mxu1 %vm42_vm0, %v33_v17  ;;  %p356_p4 = pnand %p355_p3, %p349_p0 }
  0x17   :  { %323 = vmatmul.mubr.msk.f32.gmra.mxu0 %vm42_vm0, %v26_v18  ;;  %335 = vmatmul.mubr.msk.f32.gmra.mxu1 %vm42_vm0, %v34_v19 }
  0xcb   :  { %v315_v21 = vpop.f32.mrf.mxu0  ;;  %v327_v22 = vpop.f32.mrf.mxu1 }
  0xcc   :  { %v163_v23 = vadd.f32 %v315_v21, %v268_v20  ;;  %v203_v24 = vadd.f32 %v327_v22, %v268_v20 }
  0xcd   :  { %v157_v25 = vpop.f32.mrf.mxu0  ;;  %v197_v26 = vpop.f32.mrf.mxu1 }
  0xce   :  { %237 = vst [vmem:[#allocation2 + $0x8] sm:$0xff] %v163_v23  ;;  %245 = vst [vmem:[#allocation2 + $0x48] sm:$0xff] %v203_v24  ;;  %v158_v27 = vadd.f32 %v268_v20, %v157_v25  ;;  %v198_v28 = vadd.f32 %v268_v20, %v197_v26 }
  0xcf   :  { %v318_v29 = vpop.f32.mrf.mxu0  ;;  %v330_v30 = vpop.f32.mrf.mxu1 }
  0xd0   :  { %236 = vst [vmem:[#allocation2] sm:$0xff] %v158_v27  ;;  %244 = vst [vmem:[#allocation2 + $0x40] sm:$0xff] %v198_v28  ;;  %v173_v31 = vadd.f32 %v318_v29, %v268_v20  ;;  %v213_v32 = vadd.f32 %v330_v30, %v268_v20 }
  0xd1   :  { %v167_v33 = vpop.f32.mrf.mxu0  ;;  %v207_v34 = vpop.f32.mrf.mxu1 }
  0xd2   :  { %239 = vst [vmem:[#allocation2 + $0x18] sm:$0xff] %v173_v31  ;;  %247 = vst [vmem:[#allocation2 + $0x58] sm:$0xff] %v213_v32  ;;  %v168_v35 = vadd.f32 %v268_v20, %v167_v33  ;;  %v208_v36 = vadd.f32 %v268_v20, %v207_v34 }
  0xd3   :  { %v321_v37 = vpop.f32.mrf.mxu0  ;;  %v333_v38 = vpop.f32.mrf.mxu1 }
  0xd4   :  { %238 = vst [vmem:[#allocation2 + $0x10] sm:$0xff] %v168_v35  ;;  %246 = vst [vmem:[#allocation2 + $0x50] sm:$0xff] %v208_v36  ;;  %v183_v39 = vadd.f32 %v321_v37, %v268_v20  ;;  %v223_v40 = vadd.f32 %v333_v38, %v268_v20 }
  0xd5   :  { %v177_v41 = vpop.f32.mrf.mxu0  ;;  %v217_v42 = vpop.f32.mrf.mxu1 }
  0xd6   :  { %241 = vst [vmem:[#allocation2 + $0x28] sm:$0xff] %v183_v39  ;;  %249 = vst [vmem:[#allocation2 + $0x68] sm:$0xff] %v223_v40  ;;  %v178_v43 = vadd.f32 %v268_v20, %v177_v41  ;;  %v218_v44 = vadd.f32 %v268_v20, %v217_v42 }
  0xd7   :  { %v324_v45 = vpop.f32.mrf.mxu0  ;;  %v336_v46 = vpop.f32.mrf.mxu1 }
  0xd8   :  { %240 = vst [vmem:[#allocation2 + $0x20] sm:$0xff] %v178_v43  ;;  %248 = vst [vmem:[#allocation2 + $0x60] sm:$0xff] %v218_v44  ;;  %v193_v47 = vadd.f32 %v324_v45, %v268_v20  ;;  %v233_v48 = vadd.f32 %v336_v46, %v268_v20 }
  0xd9   :  { %v187_v49 = vpop.f32.mrf.mxu0  ;;  %v227_v50 = vpop.f32.mrf.mxu1 }
  0xda   :  { %243 = vst [vmem:[#allocation2 + $0x38] sm:$0xff] %v193_v47  ;;  %251 = vst [vmem:[#allocation2 + $0x78] sm:$0xff] %v233_v48  ;;  %v188_v51 = vadd.f32 %v268_v20, %v187_v49  ;;  %v228_v52 = vadd.f32 %v268_v20, %v227_v50 }
  0xdc   :  { %242 = vst [vmem:[#allocation2 + $0x30] sm:$0xff] %v188_v51  ;;  %250 = vst [vmem:[#allocation2 + $0x70] sm:$0xff] %v228_v52 }
  0xdd   :  { %359 = shalt.err (!%p356_p4)
}
  0xde   :  { %s371_s26 = smov 128   ;;  %s372_s27 = smov 8  }
  0xdf   :  { %263 = dma.vmem_to_hbm [thread:$0]  %s258_s2, 2048, %s478_s3, [#allocation3], %s371_s26, %s371_s26, %s372_s27  }
  0xe0   :  { %368 = dma.done.wait [#allocation3], 2048  }
  0xe1   :  { %369 = vsyncadd [#allocation3], 4294965248 }
  0xe2   :  { %267 = vsyncpa [#allocation3], 1 }

</bundles_post_ra>
